<compile_context>
chip_gen: v7x
topology: tpu7x:2x2x1
jax: 0.10.0
libtpu: 0.0.40
codegen_flags: <defaults>
</compile_context>

<pallas_src>
import functools
import math

import jax
import jax.numpy as jnp
from jax.experimental import pallas as pl
from jax.experimental.pallas import tpu as pltpu


def _column_attention_kernel(xq_ref, xkv_ref,
                             wq_ref, bq_ref,
                             wkv_ref, bkv_ref,
                             bc_ref,
                             out_ref, *, num_heads, block_b, lq, lk):
    E = wq_ref.shape[0]
    hd = E // num_heads
    Bb, Lq, Lk = block_b, lq, lk

    x_q = xq_ref[...]                 # (Bb*Lq, E)   query-side activations
    x_kv = xkv_ref[...]               # (Bb*Lk, E)   key/value-side activations

    # Q projection (softmax scale pre-folded into wq/bq at pack time).
    q = jnp.dot(x_q, wq_ref[...], preferred_element_type=jnp.float32) + bq_ref[...]
    # Fused [K | collapsed-V | zero-pad] projection, 128 lanes wide.
    kv = jnp.dot(x_kv, wkv_ref[...], preferred_element_type=jnp.float32) + bkv_ref[...]

    q3 = q.reshape(Bb, Lq, E)                                   # (Bb, Lq, E)
    k3 = kv[:, :E].reshape(Bb, Lk, E)                           # (Bb, Lk, E)
    vr3 = kv[:, E:E + num_heads].reshape(Bb, Lk, num_heads)     # (Bb, Lk, H)

    # One relayout per grid step (not per head).
    kT = jnp.swapaxes(k3, 1, 2)                                 # (Bb, E, Lk)
    vrT = jnp.swapaxes(vr3, 1, 2)                               # (Bb, H, Lk)

    acc = jnp.zeros((Bb, Lq), jnp.float32)
    for h in range(num_heads):                                  # static unroll
        sl = slice(h * hd, (h + 1) * hd)
        s = jnp.einsum('bqd,bdk->bqk', q3[:, :, sl], kT[:, sl, :],
                       preferred_element_type=jnp.float32)      # (Bb, Lq, Lk)
        m = jnp.max(s, axis=-1, keepdims=True)
        p = jnp.exp(s - m)                                      # unnormalized
        l = jnp.sum(p, axis=-1)                                 # (Bb, Lq)
        # collapsed-value contraction: (Bb, Lq, Lk) * (Bb, 1, Lk) -> (Bb, Lq)
        num = jnp.sum(p * vrT[:, h, :][:, None, :], axis=-1)
        # normalize after the contraction (EUP reciprocal, off the VALU)
        acc = acc + num * pl.reciprocal(l, approx=True)

    probs = acc + bc_ref[...]                                   # (Bb, Lq) + (1,1)
    out_ref[...] = probs.reshape(1, 1, Bb * Lq)                 # lane-dense store


def pack_params(in_proj_w, in_proj_b, out_w, out_b, col_w, col_b, num_heads,
                dtype=jnp.float32):
    """Repack PyTorch-convention MHA + Linear params for the kernel.

    All algebraic folds are done in f32; `dtype` only affects the MXU-input
    weights (wq, wkv) handed to the kernel.
    """
    E = out_w.shape[0]
    hd = E // num_heads
    scale = 1.0 / math.sqrt(hd)

    wq, wk, wv = jnp.split(in_proj_w, 3, axis=0)
    bq, bk, bv = jnp.split(in_proj_b, 3, axis=0)

    # softmax scale folded into the Q projection
    wq_p = (wq.T * scale).astype(jnp.float32)                   # (E, E)
    bq_p = (bq * scale).reshape(1, E).astype(jnp.float32)

    # output projection folded into the dimension collapser (row on ctx)
    wc_row = (col_w @ out_w)[0]                                 # (E,)
    bc = (col_w @ out_b + col_b).reshape(1, 1).astype(jnp.float32)

    # collapse row folded into the V projection -> per-head collapsed values
    w_vr = (wv.T * wc_row[None, :]).reshape(E, num_heads, hd).sum(-1)   # (E, H)
    b_vr = (bv * wc_row).reshape(num_heads, hd).sum(-1)                 # (H,)

    # fused, 128-lane-wide [K^T | W_vr | zero-pad] projection
    n_kv = ((E + num_heads + 127) // 128) * 128
    wkv = jnp.zeros((E, n_kv), jnp.float32)
    wkv = wkv.at[:, :E].set(wk.T).at[:, E:E + num_heads].set(w_vr)
    bkv = jnp.zeros((n_kv,), jnp.float32)
    bkv = bkv.at[:E].set(bk).at[E:E + num_heads].set(b_vr).reshape(1, n_kv)

    # optional bf16 cast of MXU-input weights (folds already done in f32)
    wq_p = wq_p.astype(dtype)
    wkv = wkv.astype(dtype)
    return (wq_p, bq_p, wkv, bkv, bc)


def column_attention_pallas(header, nl, params, num_heads, block_b=None):
    """header: (B, Lq, E) query, nl: (B, Lk, E) key/value. Returns (B, Lq)."""
    B, Lq, E = header.shape
    _, Lk, _ = nl.shape
    wq, bq, wkv, bkv, bc = params
    n_kv = wkv.shape[1]
    act_dtype = wq.dtype                         # bf16 path if weights are bf16

    if block_b is None:
        if B >= 32:
            # big tiles amortize the ~0.35us/step overhead, but keep >=2 grid
            # tiles so the "parallel" axis can shard across v7x's 2 TensorCores
            block_b = min(64, (B + 1) // 2)
        else:
            block_b = B
    # keep the flattened (block_b*L, E) blocks sublane-aligned when tiled
    g = max(8 // math.gcd(Lq, 8), 8 // math.gcd(Lk, 8))
    block_b = ((block_b + g - 1) // g) * g
    block_b = max(1, block_b)

    B_pad = ((B + block_b - 1) // block_b) * block_b
    if B_pad != B:
        pad = B_pad - B
        header = jnp.concatenate(
            [header, jnp.zeros((pad, Lq, E), header.dtype)], axis=0)
        nl = jnp.concatenate(
            [nl, jnp.zeros((pad, Lk, E), nl.dtype)], axis=0)
    n_tiles = B_pad // block_b

    # pre-flattened 2-D activations: exact (M, K) layout the MXU wants
    xq = header.reshape(B_pad * Lq, E).astype(act_dtype)
    xkv = nl.reshape(B_pad * Lk, E).astype(act_dtype)

    w_full = lambda b: (0, 0)
    in_specs = [
        pl.BlockSpec((block_b * Lq, E), lambda b: (b, 0)),   # query activations
        pl.BlockSpec((block_b * Lk, E), lambda b: (b, 0)),   # key/value activations
        pl.BlockSpec((E, E), w_full),          # Wq^T (scale folded)
        pl.BlockSpec((1, E), w_full),          # bq   (scale folded)
        pl.BlockSpec((E, n_kv), w_full),       # [Wk^T | W_vr | pad]
        pl.BlockSpec((1, n_kv), w_full),       # [bk   | b_vr | pad]
        pl.BlockSpec((1, 1), w_full),          # folded collapse bias
    ]
    out_spec = pl.BlockSpec((1, 1, block_b * Lq), lambda b: (b, 0, 0))

    out = pl.pallas_call(
        functools.partial(_column_attention_kernel, num_heads=num_heads,
                          block_b=block_b, lq=Lq, lk=Lk),
        out_shape=jax.ShapeDtypeStruct((n_tiles, 1, block_b * Lq), jnp.float32),
        grid=(n_tiles,),
        in_specs=in_specs,
        out_specs=out_spec,
        compiler_params=pltpu.CompilerParams(
            dimension_semantics=("parallel",),
            vmem_limit_bytes=32 * 1024 * 1024),
    )(xq, xkv, wq, bq, wkv, bkv, bc)

    return out.reshape(B_pad, Lq)[:B]


def reference_forward(header, nl, in_proj_w, in_proj_b, out_w, out_b,
                      col_w, col_b, num_heads):
    """Pure-JAX mirror of nn.MultiheadAttention + Linear (PyTorch semantics)."""
    B, Lq, E = header.shape
    Lk = nl.shape[1]
    hd = E // num_heads
    wq, wk, wv = jnp.split(in_proj_w, 3, axis=0)
    bq, bk, bv = jnp.split(in_proj_b, 3, axis=0)
    q = header @ wq.T + bq
    k = nl @ wk.T + bk
    v = nl @ wv.T + bv
    qh = q.reshape(B, Lq, num_heads, hd).transpose(0, 2, 1, 3)
    kh = k.reshape(B, Lk, num_heads, hd).transpose(0, 2, 1, 3)
    vh = v.reshape(B, Lk, num_heads, hd).transpose(0, 2, 1, 3)
    s = jnp.einsum('bhqd,bhkd->bhqk', qh, kh) / jnp.sqrt(jnp.float32(hd))
    p = jax.nn.softmax(s, axis=-1)
    ctx = jnp.einsum('bhqk,bhkd->bhqd', p, vh).transpose(0, 2, 1, 3).reshape(B, Lq, E)
    attn_out = ctx @ out_w.T + out_b
    probs = attn_out @ col_w.T + col_b
    return jnp.squeeze(probs, axis=-1)


if __name__ == "__main__":
    # small shapes consistent with the module: hidden=64, 4 heads, dim_out=1
    B, Lq, Lk, E, H = 2, 8, 16, 64, 4

    key = jax.random.PRNGKey(0)
    keys = jax.random.split(key, 8)
    scale = 0.02
    header = jax.random.normal(keys[0], (B, Lq, E), jnp.float32)   # header_embedding
    nl = jax.random.normal(keys[1], (B, Lk, E), jnp.float32)       # NL_embedding

    # nn.MultiheadAttention parameters (PyTorch convention)
    in_proj_w = scale * jax.random.normal(keys[2], (3 * E, E), jnp.float32)
    in_proj_b = scale * jax.random.normal(keys[3], (3 * E,), jnp.float32)
    out_w = scale * jax.random.normal(keys[4], (E, E), jnp.float32)
    out_b = scale * jax.random.normal(keys[5], (E,), jnp.float32)
    # nn.Linear(hidden_state_size, dimension_out=1)
    col_w = scale * jax.random.normal(keys[6], (1, E), jnp.float32)
    col_b = scale * jax.random.normal(keys[7], (1,), jnp.float32)

    ref = reference_forward(header, nl, in_proj_w, in_proj_b, out_w, out_b,
                            col_w, col_b, num_heads=H)

    # f32 MXU-input path: tight check
    params = pack_params(in_proj_w, in_proj_b, out_w, out_b, col_w, col_b,
                         num_heads=H)
    out = column_attention_pallas(header, nl, params, num_heads=H)
    out = jax.block_until_ready(out)
    assert out.shape == (B, Lq)
    assert jnp.allclose(out, ref, atol=1e-4, rtol=1e-3), "f32 mismatch vs reference"

    # bf16 MXU-input path (biggest win on v5e/v6e): folds in f32, cast at boundary,
    # f32 accumulation + f32 softmax; looser tolerance as expected for bf16 inputs.
    params_bf16 = pack_params(in_proj_w, in_proj_b, out_w, out_b, col_w, col_b,
                              num_heads=H, dtype=jnp.bfloat16)
    out_bf16 = column_attention_pallas(header, nl, params_bf16, num_heads=H)
    out_bf16 = jax.block_until_ready(out_bf16)
    assert jnp.allclose(out_bf16, ref, atol=1e-2, rtol=5e-2), "bf16 mismatch vs reference"

    print("KERNEL_OK")
</pallas_src>

<mosaic_0001>
module attributes {stable_mosaic.version = 11 : i64} {
  func.func @_column_attention_kernel(%arg0: i32, %arg1: memref<16x64xf32, #tpu.memory_space<vmem>>, %arg2: memref<32x64xf32, #tpu.memory_space<vmem>>, %arg3: memref<64x64xf32, #tpu.memory_space<vmem>>, %arg4: memref<1x64xf32, #tpu.memory_space<vmem>>, %arg5: memref<64x128xf32, #tpu.memory_space<vmem>>, %arg6: memref<1x128xf32, #tpu.memory_space<vmem>>, %arg7: memref<1x1xf32, #tpu.memory_space<vmem>>, %arg8: memref<1x1x16xf32, #tpu.memory_space<vmem>>) attributes {dimension_semantics = [#tpu.dimension_semantics<parallel>], iteration_bounds = array<i64: 1>, scalar_prefetch = 0 : i64, scratch_operands = 0 : i64, tpu.core_type = #tpu.core_type<tc>, window_params = [{transform_indices = @transform_0, window_bounds = array<i64: 16, 64>}, {transform_indices = @transform_1, window_bounds = array<i64: 32, 64>}, {pipeline_mode = #tpu.pipeline_mode<synchronous>, transform_indices = @transform_2, window_bounds = array<i64: 64, 64>}, {pipeline_mode = #tpu.pipeline_mode<synchronous>, transform_indices = @transform_3, window_bounds = array<i64: 1, 64>}, {pipeline_mode = #tpu.pipeline_mode<synchronous>, transform_indices = @transform_4, window_bounds = array<i64: 64, 128>}, {pipeline_mode = #tpu.pipeline_mode<synchronous>, transform_indices = @transform_5, window_bounds = array<i64: 1, 128>}, {pipeline_mode = #tpu.pipeline_mode<synchronous>, transform_indices = @transform_6, window_bounds = array<i64: 1, 1>}, {transform_indices = @transform_7, window_bounds = array<i64: 1, 1, 16>}]} {
    %c0 = arith.constant 0 : index
    %c0_0 = arith.constant 0 : index
    %0 = vector.load %arg1[%c0, %c0_0] : memref<16x64xf32, #tpu.memory_space<vmem>>, vector<16x64xf32>
    %c0_1 = arith.constant 0 : index
    %c0_2 = arith.constant 0 : index
    %1 = vector.load %arg2[%c0_1, %c0_2] : memref<32x64xf32, #tpu.memory_space<vmem>>, vector<32x64xf32>
    %c0_3 = arith.constant 0 : index
    %c0_4 = arith.constant 0 : index
    %2 = vector.load %arg3[%c0_3, %c0_4] : memref<64x64xf32, #tpu.memory_space<vmem>>, vector<64x64xf32>
    %cst = arith.constant dense<0.000000e+00> : vector<16x64xf32>
    %3 = tpu.matmul %0, %2, %cst {dimension_numbers = #tpu.dot_dimension_numbers<[1], [0], [0], [1], [0, 0, 1, 1], [], []>} : vector<16x64xf32>, vector<64x64xf32>, vector<16x64xf32> -> vector<16x64xf32>
    %c0_5 = arith.constant 0 : index
    %c0_6 = arith.constant 0 : index
    %4 = vector.load %arg4[%c0_5, %c0_6] : memref<1x64xf32, #tpu.memory_space<vmem>>, vector<1x64xf32>
    %5 = vector.broadcast %4 : vector<1x64xf32> to vector<16x64xf32>
    %6 = arith.addf %3, %5 : vector<16x64xf32>
    %c0_7 = arith.constant 0 : index
    %c0_8 = arith.constant 0 : index
    %7 = vector.load %arg5[%c0_7, %c0_8] : memref<64x128xf32, #tpu.memory_space<vmem>>, vector<64x128xf32>
    %cst_9 = arith.constant dense<0.000000e+00> : vector<32x128xf32>
    %8 = tpu.matmul %1, %7, %cst_9 {dimension_numbers = #tpu.dot_dimension_numbers<[1], [0], [0], [1], [0, 0, 1, 1], [], []>} : vector<32x64xf32>, vector<64x128xf32>, vector<32x128xf32> -> vector<32x128xf32>
    %c0_10 = arith.constant 0 : index
    %c0_11 = arith.constant 0 : index
    %9 = vector.load %arg6[%c0_10, %c0_11] : memref<1x128xf32, #tpu.memory_space<vmem>>, vector<1x128xf32>
    %10 = vector.broadcast %9 : vector<1x128xf32> to vector<32x128xf32>
    %11 = arith.addf %8, %10 : vector<32x128xf32>
    %12 = vector.shape_cast %6 : vector<16x64xf32> to vector<2x8x64xf32>
    %13 = vector.extract_strided_slice %11 {offsets = [0, 0], sizes = [32, 64], strides = [1, 1]} : vector<32x128xf32> to vector<32x64xf32>
    %14 = vector.shape_cast %13 : vector<32x64xf32> to vector<2x16x64xf32>
    %15 = vector.extract_strided_slice %11 {offsets = [0, 64], sizes = [32, 4], strides = [1, 1]} : vector<32x128xf32> to vector<32x4xf32>
    %16 = vector.shape_cast %15 : vector<32x4xf32> to vector<2x16x4xf32>
    %17 = tpu.transpose %14, [0, 2, 1] : vector<2x16x64xf32> -> vector<2x64x16xf32>
    %18 = tpu.transpose %16, [0, 2, 1] : vector<2x16x4xf32> -> vector<2x4x16xf32>
    %cst_12 = arith.constant 0.000000e+00 : f32
    %19 = vector.broadcast %cst_12 : f32 to vector<2x8xf32>
    %20 = vector.extract_strided_slice %12 {offsets = [0, 0, 0], sizes = [2, 8, 16], strides = [1, 1, 1]} : vector<2x8x64xf32> to vector<2x8x16xf32>
    %21 = vector.extract_strided_slice %17 {offsets = [0, 0, 0], sizes = [2, 16, 16], strides = [1, 1, 1]} : vector<2x64x16xf32> to vector<2x16x16xf32>
    "tpu.trace_start"() <{level = 10 : i32, message = "bqd,bdk->bqk"}> : () -> ()
    %cst_13 = arith.constant dense<0.000000e+00> : vector<2x8x16xf32>
    %22 = tpu.matmul %20, %21, %cst_13 {dimension_numbers = #tpu.dot_dimension_numbers<[2], [1], [1], [2], [0, 0, 0, 1, 1, 2], [0], [0]>} : vector<2x8x16xf32>, vector<2x16x16xf32>, vector<2x8x16xf32> -> vector<2x8x16xf32>
    "tpu.trace_stop"() : () -> ()
    %cst_14 = arith.constant dense<0xFF800000> : vector<2x8xf32>
    %23 = vector.multi_reduction <maximumf>, %22, %cst_14 [2] : vector<2x8x16xf32> to vector<2x8xf32>
    %24 = vector.shape_cast %23 : vector<2x8xf32> to vector<2x8x1xf32>
    %25 = vector.broadcast %24 : vector<2x8x1xf32> to vector<2x8x16xf32>
    %26 = arith.subf %22, %25 : vector<2x8x16xf32>
    %27 = math.exp %26 : vector<2x8x16xf32>
    %cst_15 = arith.constant dense<0.000000e+00> : vector<2x8xf32>
    %28 = vector.multi_reduction <add>, %27, %cst_15 [2] : vector<2x8x16xf32> to vector<2x8xf32>
    %29 = vector.extract_strided_slice %18 {offsets = [0, 0, 0], sizes = [2, 1, 16], strides = [1, 1, 1]} : vector<2x4x16xf32> to vector<2x1x16xf32>
    %30 = vector.shape_cast %29 : vector<2x1x16xf32> to vector<2x16xf32>
    %31 = vector.shape_cast %30 : vector<2x16xf32> to vector<2x1x16xf32>
    %32 = vector.broadcast %31 : vector<2x1x16xf32> to vector<2x8x16xf32>
    %33 = arith.mulf %27, %32 : vector<2x8x16xf32>
    %cst_16 = arith.constant dense<0.000000e+00> : vector<2x8xf32>
    %34 = vector.multi_reduction <add>, %33, %cst_16 [2] : vector<2x8x16xf32> to vector<2x8xf32>
    %35 = tpu.reciprocal %28 {approx = true} : vector<2x8xf32> -> vector<2x8xf32>
    %36 = arith.mulf %34, %35 : vector<2x8xf32>
    %37 = arith.addf %19, %36 : vector<2x8xf32>
    %38 = vector.extract_strided_slice %12 {offsets = [0, 0, 16], sizes = [2, 8, 16], strides = [1, 1, 1]} : vector<2x8x64xf32> to vector<2x8x16xf32>
    %39 = vector.extract_strided_slice %17 {offsets = [0, 16, 0], sizes = [2, 16, 16], strides = [1, 1, 1]} : vector<2x64x16xf32> to vector<2x16x16xf32>
    "tpu.trace_start"() <{level = 10 : i32, message = "bqd,bdk->bqk"}> : () -> ()
    %cst_17 = arith.constant dense<0.000000e+00> : vector<2x8x16xf32>
    %40 = tpu.matmul %38, %39, %cst_17 {dimension_numbers = #tpu.dot_dimension_numbers<[2], [1], [1], [2], [0, 0, 0, 1, 1, 2], [0], [0]>} : vector<2x8x16xf32>, vector<2x16x16xf32>, vector<2x8x16xf32> -> vector<2x8x16xf32>
    "tpu.trace_stop"() : () -> ()
    %cst_18 = arith.constant dense<0xFF800000> : vector<2x8xf32>
    %41 = vector.multi_reduction <maximumf>, %40, %cst_18 [2] : vector<2x8x16xf32> to vector<2x8xf32>
    %42 = vector.shape_cast %41 : vector<2x8xf32> to vector<2x8x1xf32>
    %43 = vector.broadcast %42 : vector<2x8x1xf32> to vector<2x8x16xf32>
    %44 = arith.subf %40, %43 : vector<2x8x16xf32>
    %45 = math.exp %44 : vector<2x8x16xf32>
    %cst_19 = arith.constant dense<0.000000e+00> : vector<2x8xf32>
    %46 = vector.multi_reduction <add>, %45, %cst_19 [2] : vector<2x8x16xf32> to vector<2x8xf32>
    %47 = vector.extract_strided_slice %18 {offsets = [0, 1, 0], sizes = [2, 1, 16], strides = [1, 1, 1]} : vector<2x4x16xf32> to vector<2x1x16xf32>
    %48 = vector.shape_cast %47 : vector<2x1x16xf32> to vector<2x16xf32>
    %49 = vector.shape_cast %48 : vector<2x16xf32> to vector<2x1x16xf32>
    %50 = vector.broadcast %49 : vector<2x1x16xf32> to vector<2x8x16xf32>
    %51 = arith.mulf %45, %50 : vector<2x8x16xf32>
    %cst_20 = arith.constant dense<0.000000e+00> : vector<2x8xf32>
    %52 = vector.multi_reduction <add>, %51, %cst_20 [2] : vector<2x8x16xf32> to vector<2x8xf32>
    %53 = tpu.reciprocal %46 {approx = true} : vector<2x8xf32> -> vector<2x8xf32>
    %54 = arith.mulf %52, %53 : vector<2x8xf32>
    %55 = arith.addf %37, %54 : vector<2x8xf32>
    %56 = vector.extract_strided_slice %12 {offsets = [0, 0, 32], sizes = [2, 8, 16], strides = [1, 1, 1]} : vector<2x8x64xf32> to vector<2x8x16xf32>
    %57 = vector.extract_strided_slice %17 {offsets = [0, 32, 0], sizes = [2, 16, 16], strides = [1, 1, 1]} : vector<2x64x16xf32> to vector<2x16x16xf32>
    "tpu.trace_start"() <{level = 10 : i32, message = "bqd,bdk->bqk"}> : () -> ()
    %cst_21 = arith.constant dense<0.000000e+00> : vector<2x8x16xf32>
    %58 = tpu.matmul %56, %57, %cst_21 {dimension_numbers = #tpu.dot_dimension_numbers<[2], [1], [1], [2], [0, 0, 0, 1, 1, 2], [0], [0]>} : vector<2x8x16xf32>, vector<2x16x16xf32>, vector<2x8x16xf32> -> vector<2x8x16xf32>
    "tpu.trace_stop"() : () -> ()
    %cst_22 = arith.constant dense<0xFF800000> : vector<2x8xf32>
    %59 = vector.multi_reduction <maximumf>, %58, %cst_22 [2] : vector<2x8x16xf32> to vector<2x8xf32>
    %60 = vector.shape_cast %59 : vector<2x8xf32> to vector<2x8x1xf32>
    %61 = vector.broadcast %60 : vector<2x8x1xf32> to vector<2x8x16xf32>
    %62 = arith.subf %58, %61 : vector<2x8x16xf32>
    %63 = math.exp %62 : vector<2x8x16xf32>
    %cst_23 = arith.constant dense<0.000000e+00> : vector<2x8xf32>
    %64 = vector.multi_reduction <add>, %63, %cst_23 [2] : vector<2x8x16xf32> to vector<2x8xf32>
    %65 = vector.extract_strided_slice %18 {offsets = [0, 2, 0], sizes = [2, 1, 16], strides = [1, 1, 1]} : vector<2x4x16xf32> to vector<2x1x16xf32>
    %66 = vector.shape_cast %65 : vector<2x1x16xf32> to vector<2x16xf32>
    %67 = vector.shape_cast %66 : vector<2x16xf32> to vector<2x1x16xf32>
    %68 = vector.broadcast %67 : vector<2x1x16xf32> to vector<2x8x16xf32>
    %69 = arith.mulf %63, %68 : vector<2x8x16xf32>
    %cst_24 = arith.constant dense<0.000000e+00> : vector<2x8xf32>
    %70 = vector.multi_reduction <add>, %69, %cst_24 [2] : vector<2x8x16xf32> to vector<2x8xf32>
    %71 = tpu.reciprocal %64 {approx = true} : vector<2x8xf32> -> vector<2x8xf32>
    %72 = arith.mulf %70, %71 : vector<2x8xf32>
    %73 = arith.addf %55, %72 : vector<2x8xf32>
    %74 = vector.extract_strided_slice %12 {offsets = [0, 0, 48], sizes = [2, 8, 16], strides = [1, 1, 1]} : vector<2x8x64xf32> to vector<2x8x16xf32>
    %75 = vector.extract_strided_slice %17 {offsets = [0, 48, 0], sizes = [2, 16, 16], strides = [1, 1, 1]} : vector<2x64x16xf32> to vector<2x16x16xf32>
    "tpu.trace_start"() <{level = 10 : i32, message = "bqd,bdk->bqk"}> : () -> ()
    %cst_25 = arith.constant dense<0.000000e+00> : vector<2x8x16xf32>
    %76 = tpu.matmul %74, %75, %cst_25 {dimension_numbers = #tpu.dot_dimension_numbers<[2], [1], [1], [2], [0, 0, 0, 1, 1, 2], [0], [0]>} : vector<2x8x16xf32>, vector<2x16x16xf32>, vector<2x8x16xf32> -> vector<2x8x16xf32>
    "tpu.trace_stop"() : () -> ()
    %cst_26 = arith.constant dense<0xFF800000> : vector<2x8xf32>
    %77 = vector.multi_reduction <maximumf>, %76, %cst_26 [2] : vector<2x8x16xf32> to vector<2x8xf32>
    %78 = vector.shape_cast %77 : vector<2x8xf32> to vector<2x8x1xf32>
    %79 = vector.broadcast %78 : vector<2x8x1xf32> to vector<2x8x16xf32>
    %80 = arith.subf %76, %79 : vector<2x8x16xf32>
    %81 = math.exp %80 : vector<2x8x16xf32>
    %cst_27 = arith.constant dense<0.000000e+00> : vector<2x8xf32>
    %82 = vector.multi_reduction <add>, %81, %cst_27 [2] : vector<2x8x16xf32> to vector<2x8xf32>
    %83 = vector.extract_strided_slice %18 {offsets = [0, 3, 0], sizes = [2, 1, 16], strides = [1, 1, 1]} : vector<2x4x16xf32> to vector<2x1x16xf32>
    %84 = vector.shape_cast %83 : vector<2x1x16xf32> to vector<2x16xf32>
    %85 = vector.shape_cast %84 : vector<2x16xf32> to vector<2x1x16xf32>
    %86 = vector.broadcast %85 : vector<2x1x16xf32> to vector<2x8x16xf32>
    %87 = arith.mulf %81, %86 : vector<2x8x16xf32>
    %cst_28 = arith.constant dense<0.000000e+00> : vector<2x8xf32>
    %88 = vector.multi_reduction <add>, %87, %cst_28 [2] : vector<2x8x16xf32> to vector<2x8xf32>
    %89 = tpu.reciprocal %82 {approx = true} : vector<2x8xf32> -> vector<2x8xf32>
    %90 = arith.mulf %88, %89 : vector<2x8xf32>
    %91 = arith.addf %73, %90 : vector<2x8xf32>
    %c0_29 = arith.constant 0 : index
    %c0_30 = arith.constant 0 : index
    %92 = vector.load %arg7[%c0_29, %c0_30] : memref<1x1xf32, #tpu.memory_space<vmem>>, vector<1x1xf32>
    %93 = vector.broadcast %92 : vector<1x1xf32> to vector<2x8xf32>
    %94 = arith.addf %91, %93 : vector<2x8xf32>
    %95 = vector.shape_cast %94 : vector<2x8xf32> to vector<1x1x16xf32>
    %c0_31 = arith.constant 0 : index
    %c0_32 = arith.constant 0 : index
    %c0_33 = arith.constant 0 : index
    %96 = vector.load %arg8[%c0_31, %c0_32, %c0_33] : memref<1x1x16xf32, #tpu.memory_space<vmem>>, vector<1x1x16xf32>
    tpu.vector_store %arg8[%c0_31, %c0_32, %c0_33], %95 {strides = array<i32>} : memref<1x1x16xf32, #tpu.memory_space<vmem>>, vector<1x1x16xf32>,
    return
  }
  func.func @transform_0(%arg0: i32) -> (i32, i32) {
    %c0_i32 = arith.constant 0 : i32
    %c0_i32_0 = arith.constant 0 : i32
    return %arg0, %c0_i32 : i32, i32
  }
  func.func @transform_1(%arg0: i32) -> (i32, i32) {
    %c0_i32 = arith.constant 0 : i32
    %c0_i32_0 = arith.constant 0 : i32
    return %arg0, %c0_i32 : i32, i32
  }
  func.func @transform_2(%arg0: i32) -> (i32, i32) {
    %c0_i32 = arith.constant 0 : i32
    %c0_i32_0 = arith.constant 0 : i32
    %c0_i32_1 = arith.constant 0 : i32
    return %c0_i32, %c0_i32_0 : i32, i32
  }
  func.func @transform_3(%arg0: i32) -> (i32, i32) {
    %c0_i32 = arith.constant 0 : i32
    %c0_i32_0 = arith.constant 0 : i32
    %c0_i32_1 = arith.constant 0 : i32
    return %c0_i32, %c0_i32_0 : i32, i32
  }
  func.func @transform_4(%arg0: i32) -> (i32, i32) {
    %c0_i32 = arith.constant 0 : i32
    %c0_i32_0 = arith.constant 0 : i32
    %c0_i32_1 = arith.constant 0 : i32
    return %c0_i32, %c0_i32_0 : i32, i32
  }
  func.func @transform_5(%arg0: i32) -> (i32, i32) {
    %c0_i32 = arith.constant 0 : i32
    %c0_i32_0 = arith.constant 0 : i32
    %c0_i32_1 = arith.constant 0 : i32
    return %c0_i32, %c0_i32_0 : i32, i32
  }
  func.func @transform_6(%arg0: i32) -> (i32, i32) {
    %c0_i32 = arith.constant 0 : i32
    %c0_i32_0 = arith.constant 0 : i32
    %c0_i32_1 = arith.constant 0 : i32
    return %c0_i32, %c0_i32_0 : i32, i32
  }
  func.func @transform_7(%arg0: i32) -> (i32, i32, i32) {
    %c0_i32 = arith.constant 0 : i32
    %c0_i32_0 = arith.constant 0 : i32
    %c0_i32_1 = arith.constant 0 : i32
    return %arg0, %c0_i32, %c0_i32_0 : i32, i32, i32
  }
}

</mosaic_0001>

<bundles_post_ra>
// kernel: tpu_custom_call.1
= control target key start
LH: loop header
LB: loop body
LE: loop exit
PB: predicated region body
PF: predicated region fallthrough
CT: control target
= control target key end

     0   :  { %s1929_s0 = inlined_call_operand.hbm [shape: f32[16,64], index: 0, kind: input, shape index: {}]   ;;  %s1930_s1 = inlined_call_operand.hbm [shape: f32[32,64], index: 1, kind: input, shape index: {}]   ;;  %s1931_s2 = inlined_call_operand.hbm [shape: f32[64,64], index: 2, kind: input, shape index: {}]   ;;  %s1932_s3 = inlined_call_operand.vmem [shape: f32[1,64], index: 3, kind: input, shape index: {}]   ;;  %s1933_s4 = inlined_call_operand.hbm [shape: f32[64,128], index: 4, kind: input, shape index: {}]   ;;  %s1934_s5 = inlined_call_operand.vmem [shape: f32[1,128], index: 5, kind: input, shape index: {}]   ;;  %s1935_s6 = inlined_call_operand.<no memory space> [shape: f32[1,1], index: 6, kind: input, shape index: {}]   ;;  %s1936_s7 = inlined_call_operand.hbm [shape: f32[1,1,16], index: 7, kind: output, shape index: {}]  }
   0x1   :  { %v12_v0 = vstv %s1935_s6 }
   0x2   :  { %13 = vst [vmem:[#allocation2] sm:$0x1] %v12_v0 }
   0x3   :  { %14 = vsyncpa [#allocation4], 0 }
   0x4   :  { %15 = vsyncpa [#allocation7], 0 }
   0x5   :  { %16 = vsyncpa [#allocation10], 0 }
   0x6   :  { %17 = vsyncpa [#allocation5], 0  ;;  %s1669_s26 = smov [#allocation6]   ;;  %s1670_s28 = smov [#allocation3]  }
   0x7   :  { %s35_s27 = sshll.u32 %s1669_s26, 4  ;;  %s23_s29 = sshll.u32 %s1670_s28, 4  ;;  %s36_s27 = int_to_ptr.vmem [resolvable:$true] %s35_s27  ;;  %s1727_s29 = int_to_ptr.vmem [resolvable:$true] %s23_s29 }
   0x8   :  { %s1551_s9 = scalar_lea.hbm %s1930_s1, 512 }
   0x9   :  { %p1552_p0 = scmp.ne.s32.totalorder %s1930_s1, %s1551_s9  ;;  %p1555_p1 = scmp.lt.u32.totalorder %s1551_s9, %s1930_s1 }
   0xb   :  { %p1557_p2 = pnand %p1555_p1, %p1552_p0 }
   0xd   :  { %1560 = shalt.err (!%p1557_p2)
}
   0xe   :  { %s1561_s13 = scalar_lea.vmem %s36_s27, 512  ;;  %p1566_p4 = scmp.lt.s32.totalorder %s36_s27, %s36_s27 }
   0xf   :  { %p1562_p3 = scmp.ne.s32.totalorder %s36_s27, %s1561_s13  ;;  %p1567_p5 = scmp.lt.s32.totalorder %s1561_s13, %s1561_s13 }
  0x11   :  { %p1568_p6 = por %p1567_p5, %p1566_p4 }
  0x13   :  { %p1569_p7 = pnand %p1568_p6, %p1562_p3 }
  0x15   :  { %1572 = shalt.err (!%p1569_p7)
}
  0x16   :  { %s1671_s14 = smov 128   ;;  %s1672_s15 = smov 8  }
  0x17   :  { %41 = dma.hbm_to_vmem [thread:$0]  %s1930_s1, 512, %s36_s27, [#allocation7], %s1671_s14, %s1671_s14, %s1672_s15  }
  0x18   :  { %s1573_s20 = scalar_lea.hbm %s1929_s0, 256 }
  0x19   :  { %p1574_p8 = scmp.ne.s32.totalorder %s1929_s0, %s1573_s20  ;;  %p1577_p9 = scmp.lt.u32.totalorder %s1573_s20, %s1929_s0 }
  0x1b   :  { %p1579_p10 = pnand %p1577_p9, %p1574_p8 }
  0x1d   :  { %1582 = shalt.err (!%p1579_p10)
}
  0x1e   :  { %s1583_s25 = scalar_lea.vmem %s1727_s29, 256  ;;  %p1588_p12 = scmp.lt.s32.totalorder %s1727_s29, %s1727_s29 }
  0x1f   :  { %p1584_p11 = scmp.ne.s32.totalorder %s1727_s29, %s1583_s25  ;;  %p1589_p13 = scmp.lt.s32.totalorder %s1583_s25, %s1583_s25 }
  0x21   :  { %p1590_p0 = por %p1589_p13, %p1588_p12 }
  0x23   :  { %p1591_p1 = pnand %p1590_p0, %p1584_p11 }
  0x25   :  { %1594 = shalt.err (!%p1591_p1)
}
  0x26   :  { %29 = dma.hbm_to_vmem [thread:$0]  %s1929_s0, 256, %s1727_s29, [#allocation4], %s1671_s14, %s1671_s14, %s1672_s15  }
  0x27   :  { %s1673_s27 = smov [#allocation8]   ;;  %s1674_s30 = smov [#allocation9]  }
  0x28   :  { %s47_s28 = sshll.u32 %s1673_s27, 4  ;;  %s61_s8 = sshll.u32 %s1674_s30, 4  ;;  %s48_s28 = int_to_ptr.vmem [resolvable:$true] %s47_s28  ;;  %s1764_s8 = int_to_ptr.vmem [resolvable:$true] %s61_s8 }
  0x29   :  { %s1595_s11 = scalar_lea.hbm %s1931_s2, 1024 }
  0x2a   :  { %p1596_p2 = scmp.ne.s32.totalorder %s1931_s2, %s1595_s11  ;;  %p1599_p3 = scmp.lt.u32.totalorder %s1595_s11, %s1931_s2 }
  0x2c   :  { %p1601_p4 = pnand %p1599_p3, %p1596_p2 }
  0x2e   :  { %1604 = shalt.err (!%p1601_p4)
}
  0x2f   :  { %s1605_s0 = scalar_lea.vmem %s48_s28, 1024  ;;  %p1610_p6 = scmp.lt.s32.totalorder %s48_s28, %s48_s28 }
  0x30   :  { %p1606_p5 = scmp.ne.s32.totalorder %s48_s28, %s1605_s0  ;;  %p1611_p7 = scmp.lt.s32.totalorder %s1605_s0, %s1605_s0 }
  0x32   :  { %p1612_p8 = por %p1611_p7, %p1610_p6 }
  0x34   :  { %p1613_p9 = pnand %p1612_p8, %p1606_p5 }
  0x36   :  { %1616 = shalt.err (!%p1613_p9)
}
  0x37   :  { %53 = dma.hbm_to_vmem [thread:$0]  %s1931_s2, 1024, %s48_s28, [#allocation7], %s1671_s14, %s1671_s14, %s1672_s15  }
  0x38   :  { %s1617_s20 = scalar_lea.hbm %s1933_s4, 1024 }
  0x39   :  { %p1618_p10 = scmp.ne.s32.totalorder %s1933_s4, %s1617_s20  ;;  %p1621_p11 = scmp.lt.u32.totalorder %s1617_s20, %s1933_s4 }
  0x3b   :  { %p1623_p12 = pnand %p1621_p11, %p1618_p10 }
  0x3d   :  { %1626 = shalt.err (!%p1623_p12)
}
  0x3e   :  { %s1627_s25 = scalar_lea.vmem %s1764_s8, 1024  ;;  %p1632_p0 = scmp.lt.s32.totalorder %s1764_s8, %s1764_s8 }
  0x3f   :  { %p1628_p13 = scmp.ne.s32.totalorder %s1764_s8, %s1627_s25  ;;  %p1633_p1 = scmp.lt.s32.totalorder %s1627_s25, %s1627_s25 }
  0x41   :  { %p1634_p2 = por %p1633_p1, %p1632_p0 }
  0x43   :  { %p1635_p3 = pnand %p1634_p2, %p1628_p13 }
  0x45   :  { %1638 = shalt.err (!%p1635_p3)
}
  0x46   :  { %67 = dma.hbm_to_vmem [thread:$0]  %s1933_s4, 1024, %s1764_s8, [#allocation10], %s1671_s14, %s1671_s14, %s1672_s15  }
  0x47   :  { %1661 = dma.done.wait [#allocation4], 256  }
  0x48   :  { %1662 = vsyncadd [#allocation4], 4294967040 }
  0x49   :  { %1663 = dma.done.wait [#allocation7], 1536  }
  0x4a   :  { %1664 = vsyncadd [#allocation7], 4294965760 }
  0x4b   :  { %1665 = dma.done.wait [#allocation10], 1024  }
  0x4c   :  { %1666 = vsyncadd [#allocation10], 4294966272  ;;  %v187_v1 = vld [vmem:[#allocation9] sm:$0xff]  ;;  %v188_v2 = vld [vmem:[#allocation9 + $0x8] sm:$0xff]  ;;  %vm105_vm0 = vcmask 523264   ;;  %v1675_v31 = vmov 0.0|0.0  }
  0x4d   :  { %v189_v3 = vld [vmem:[#allocation9 + $0x10] sm:$0xff]  ;;  %v1425_v4 = vpack.c.bf16 %v188_v2, %v187_v1  ;;  %v190_v5 = vld [vmem:[#allocation9 + $0x18] sm:$0xff]  ;;  %v191_v6 = vld [vmem:[#allocation9 + $0x20] sm:$0xff]  ;;  %vm1676_vm1 = vmmov 0   ;;  %v1677_v32 = vmov 0.0   ;;  %vm379_vm2 = vcmask 130048  }
  0x4e   :  { %v1429_v7 = vpack.c.bf16 %v190_v5, %v189_v3  ;;  %v192_v8 = vld [vmem:[#allocation9 + $0x28] sm:$0xff]  ;;  %v90_v9 = vld [vmem:[#allocation8] sm:$0xff]  ;;  %v92_v12 = vld [vmem:[#allocation8 + $0x10] sm:$0xff]  ;;  %s1679_s15 = smov 112   ;;  %s1681_s28 = smov 64   ;;  %vm1211_vm4 = vcmask 130112  }
  0x4f   :  { %v91_v10 = vld [vmem:[#allocation8 + $0x8] sm:$0xff]  ;;  %1426 = vmatprep.subr.bf16.mxu1 %v1425_v4  ;;  %v93_v13 = vld [vmem:[#allocation8 + $0x18] sm:$0xff]  ;;  %v86_v15 = vld [vmem:[#allocation6] sm:$0xff]  ;;  %v1433_v17 = vpack.c.bf16 %v192_v8, %v191_v6  ;;  %s1683_s30 = smov [#allocation11]   ;;  %vm1214_vm5 = vcmask 122880  }
  0x50   :  { %v1409_v11 = vpack.c.bf16 %v91_v10, %v90_v9  ;;  %1428 = vmatpush3.bf16.msra.mxu1 %v1425_v4  ;;  %v1413_v14 = vpack.c.bf16 %v93_v13, %v92_v12  ;;  %v94_v16 = vld [vmem:[#allocation8 + $0x20] sm:$0xff]  ;;  %v95_v18 = vld [vmem:[#allocation8 + $0x28] sm:$0xff]  ;;  %v193_v19 = vld [vmem:[#allocation9 + $0x30] sm:$0xff]  ;;  %1347 = vmatprep.mubr.msk.f32.mxu1 %vm105_vm0, %v86_v15  ;;  %s1222_s8 = sshll.u32 %s1683_s30, 4  ;;  %s1223_s8 = int_to_ptr.vmem [resolvable:$true] %s1222_s8 }
  0x51   :  { %1430 = vmatprep.subr.bf16.mxu1 %v1429_v7  ;;  %v194_v20 = vld [vmem:[#allocation9 + $0x38] sm:$0xff]  ;;  %v84_v21 = vld [vmem:[#allocation3] sm:$0xff]  ;;  %v1417_v22 = vpack.c.bf16 %v95_v18, %v94_v16  ;;  %v87_v27 = vld [vmem:[#allocation6 + $0x8] sm:$0xff]  ;;  %s1639_s9 = scalar_lea.vmem %s1223_s8, 16  ;;  %s1643_s10 = scalar_lea.vmem %s1223_s8, 32 }
  0x52   :  { %1410 = vmatprep.subr.bf16.mxu0 %v1409_v11  ;;  %1328 = vmatprep.mubr.msk.f32.mxu0 %vm105_vm0, %v84_v21  ;;  %v96_v23 = vld [vmem:[#allocation8 + $0x30] sm:$0xff]  ;;  %v97_v24 = vld [vmem:[#allocation8 + $0x38] sm:$0xff]  ;;  %v1437_v25 = vpack.c.bf16 %v194_v20, %v193_v19  ;;  %v1236_v33 = vld [vmem:[%s1934_s5] ss:$0 sm:$0xff]  ;;  %s1678_s5 = smov 96   ;;  %p1640_p4 = scmp.ne.s32.totalorder %s1223_s8, %s1639_s9 }
  0x53   :  { %1412 = vmatpush3.bf16.msra.mxu0 %v1409_v11  ;;  %v1421_v26 = vpack.c.bf16 %v97_v24, %v96_v23  ;;  %v88_v28 = vld [vmem:[#allocation6 + $0x10] sm:$0xff]  ;;  %v85_v29 = vld [vmem:[#allocation3 + $0x8] sm:$0xff]  ;;  %vm1818_vm3 = vmpackc.low %vm379_vm2, %vm379_vm2  ;;  %p1644_p5 = scmp.lt.s32.totalorder %s1223_s8, %s1223_s8  ;;  %p1645_p6 = scmp.lt.s32.totalorder %s1643_s10, %s1639_s9 }
  0x54   :  { %1414 = vmatprep.subr.bf16.mxu0 %v1413_v14  ;;  %1432 = vmatpush3.bf16.msra.mxu1 %v1429_v7  ;;  %v89_v30 = vld [vmem:[#allocation6 + $0x18] sm:$0xff]  ;;  %v1233_v47 = vld [vmem:[%s1932_s3] ss:$0 sm:$0xff]  ;;  %s1680_s3 = smov 80  }
  0x55   :  { %1434 = vmatprep.subr.bf16.mxu1 %v1433_v17  ;;  %p1646_p7 = por %p1645_p6, %p1644_p5 }
  0x57   :  { %1416 = vmatpush3.bf16.msra.mxu0 %v1413_v14  ;;  %p1647_p8 = pnand %p1646_p7, %p1640_p4 }
  0x58   :  { %1418 = vmatprep.subr.bf16.mxu0 %v1417_v22  ;;  %1436 = vmatpush3.bf16.msra.mxu1 %v1433_v17 }
  0x59   :  { %1438 = vmatprep.subr.bf16.mxu1 %v1437_v25 }
  0x5b   :  { %1420 = vmatpush3.bf16.msra.mxu0 %v1417_v22 }
  0x5c   :  { %1422 = vmatprep.subr.bf16.mxu0 %v1421_v26  ;;  %1440 = vmatpush3.bf16.msra.mxu1 %v1437_v25 }
  0x5d   :  { %1445 = vmatprep.subr.bf16.mxu1 %v1675_v31 }
  0x5f   :  { %1424 = vmatpush3.bf16.msra.mxu0 %v1421_v26  ;;  %1348 = vmatmul.mubr.msk.f32.vlgmr.msra.gmra.mrb[0].mxu1 %vm105_vm0, %v87_v27 }
  0x60   :  { %1350 = vmatprep.mubr.msk.f32.mxu1 %vm105_vm0, %v88_v28  ;;  %1441 = vmatprep.subr.bf16.mxu0 %v1675_v31 }
  0x62   :  { %1329 = vmatmul.mubr.msk.f32.vlgmr.msra.gmra.mrb[0].mxu0 %vm105_vm0, %v85_v29 }
  0x63   :  { %1351 = vmatmul.mubr.msk.f32.gmra.mrb[2].mxu1 %vm105_vm0, %v89_v30  ;;  %1357 = vmatprep.mubr.msk.f32.mxu0 %vm1676_vm1, %v1677_v32 }
  0x64   :  { %1364 = vmatprep.mubr.msk.f32.mxu1 %vm1676_vm1, %v1677_v32 }
 0x132   :  { %v1349_v34 = vpop.f32.mrb[0].mxu1 }
 0x133   :  { %v286_v35 = vadd.f32 %v1349_v34, %v1236_v33  ;;  %v280_v36 = vpop.f32.mrb[1].mxu1 }
 0x134   :  { %v281_v37 = vadd.f32 %v1236_v33, %v280_v36 }
 0x135   :  { %v1330_v38 = vpop.f32.mrb[0].mxu0 }
 0x136   :  { %v178_v39 = vpop.f32.mrb[1].mxu0  ;;  %v1352_v40 = vpop.f32.mrb[2].mxu1  ;;  %v1498_v41 = vpack.i.bf16 %v286_v35, %v281_v37  ;;  %v1442_v42 = vpack.c.bf16 %v286_v35, %v281_v37  ;;  %v184_v50 = vadd.f32 %v1330_v38, %v1233_v47 }
 0x137   :  { %v296_v44 = vadd.f32 %v1352_v40, %v1236_v33  ;;  %v290_v45 = vpop.f32.mrb[3].mxu1  ;;  %v179_v51 = vadd.f32 %v1233_v47, %v178_v39 }
 0x138   :  { %v291_v46 = vadd.f32 %v1236_v33, %v290_v45  ;;  %1499 = vrot.lane.b32.xlu1 %v1498_v41, %s1678_s5  ;;  %1489 = vrot.lane.b32.xlu0 %v1498_v41, %s1679_s15 }
 0x139   :  { %1444 = vmatpush3.bf16.xpose.msk.msra.mxu0 %vm1818_vm3, %v1442_v42 }
 0x13a   :  { %v1446_v48 = vpack.c.bf16 %v296_v44, %v291_v46  ;;  %v1503_v49 = vpack.i.bf16 %v296_v44, %v291_v46  ;;  %1449 = vmatprep.subr.bf16.mxu0 %v1675_v31 }
 0x13c   :  { %1448 = vmatpush3.bf16.xpose.msk.msra.mxu1 %vm1818_vm3, %v1446_v48  ;;  %1504 = vrot.lane.b32.xlu1 %v1503_v49, %s1678_s5 }
 0x13d   :  { %1494 = vrot.lane.b32.xlu0 %v1503_v49, %s1679_s15  ;;  %1453 = vmatprep.subr.bf16.mxu1 %v1675_v31 }
 0x140   :  { %1358 = vmatmul.mubr.msk.f32.vlgmr.msra.gmra.mrb[2].mxu0 %vm379_vm2, %v179_v51  ;;  %656 = vrot.lane.b32.xlu1 %v184_v50, %s1679_s15 }
 0x141   :  { %574 = vrot.lane.b32.xlu0 %v179_v51, %s1679_s15  ;;  %1371 = vmatprep.mubr.msk.f32.mxu0 %vm1676_vm1, %v1677_v32 }
 0x143   :  { %1365 = vmatmul.mubr.msk.f32.vlgmr.msra.gmra.mrb[4].mxu1 %vm379_vm2, %v184_v50 }
 0x144   :  { %1514 = vrot.lane.b32.xlu1 %v1503_v49, %s1680_s3  ;;  %1378 = vmatprep.mubr.msk.f32.mxu1 %vm1676_vm1, %v1677_v32 }
 0x145   :  { %1509 = vrot.lane.b32.xlu0 %v1498_v41, %s1680_s3 }
 0x148   :  { %860 = vrot.lane.b32.xlu1 %v184_v50, %s1678_s5 }
 0x149   :  { %778 = vrot.lane.b32.xlu0 %v179_v51, %s1678_s5 }
 0x14c   :  { %1064 = vrot.lane.b32.xlu1 %v184_v50, %s1680_s3 }
 0x14d   :  { %982 = vrot.lane.b32.xlu0 %v179_v51, %s1680_s3 }
 0x150   :  { %305 = vrot.lane.b32.xlu1 %v286_v35, %s1681_s28 }
 0x151   :  { %303 = vrot.lane.b32.xlu0 %v281_v37, %s1681_s28 }
 0x155   :  { %309 = vrot.lane.b32.xlu0 %v296_v44, %s1681_s28 }
 0x159   :  { %307 = vrot.lane.b32.xlu0 %v291_v46, %s1681_s28 }
 0x1aa   :  { %v1500_v52 = vpop.permute.xlu1 %1499  ;;  %v1490_v53 = vpop.permute.xlu0 %1489 }
 0x1ab   :  { %v1492_v54 = vunpack.i.h.bf16 %v1490_v53  ;;  %v1491_v55 = vunpack.i.l.bf16 %v1490_v53  ;;  %v1502_v61 = vunpack.i.h.bf16 %v1500_v52  ;;  %v1501_v62 = vunpack.i.l.bf16 %v1500_v52 }
 0x1ad   :  { %v1450_v56 = vpack.c.bf16 %v1492_v54, %v1491_v55  ;;  %v1458_v1 = vpack.c.bf16 %v1502_v61, %v1501_v62  ;;  %v1682_v54 = vmov 0  }
 0x1ae   :  { %v1505_v57 = vpop.permute.xlu1 %1504 }
 0x1af   :  { %v1495_v58 = vpop.permute.xlu0 %1494  ;;  %1452 = vmatpush3.bf16.xpose.msk.msra.mxu0 %vm1818_vm3, %v1450_v56  ;;  %v1507_v3 = vunpack.i.h.bf16 %v1505_v57  ;;  %v1506_v4 = vunpack.i.l.bf16 %v1505_v57 }
 0x1b0   :  { %v1497_v59 = vunpack.i.h.bf16 %v1495_v58  ;;  %v1496_v60 = vunpack.i.l.bf16 %v1495_v58  ;;  %1457 = vmatprep.subr.bf16.mxu0 %v1675_v31 }
 0x1b1   :  { %v1462_v8 = vpack.c.bf16 %v1507_v3, %v1506_v4 }
 0x1b2   :  { %v1454_v63 = vpack.c.bf16 %v1497_v59, %v1496_v60  ;;  %v657_v2 = vpop.permute.xlu1 %656 }
 0x1b3   :  { %v575_v0 = vpop.permute.xlu0 %574 }
 0x1b4   :  { %1456 = vmatpush3.bf16.xpose.msk.msra.mxu1 %vm1818_vm3, %v1454_v63  ;;  %v552_v63 = vlaneseq }
 0x1b5   :  { %1461 = vmatprep.subr.bf16.mxu1 %v1675_v31 }
 0x1b6   :  { %1372 = vmatmul.mubr.msk.f32.vlgmr.msra.gmra.mrb[4].mxu0 %vm379_vm2, %v575_v0  ;;  %v1515_v9 = vpop.permute.xlu1 %1514 }
 0x1b7   :  { %v1510_v5 = vpop.permute.xlu0 %1509  ;;  %1460 = vmatpush3.bf16.xpose.msk.msra.mxu0 %vm1818_vm3, %v1458_v1  ;;  %1385 = vmatprep.mubr.msk.f32.mxu0 %vm1676_vm1, %v1677_v32  ;;  %v1517_v12 = vunpack.i.h.bf16 %v1515_v9  ;;  %v1516_v13 = vunpack.i.l.bf16 %v1515_v9 }
 0x1b8   :  { %1465 = vmatprep.subr.bf16.mxu0 %v1675_v31  ;;  %v1512_v6 = vunpack.i.h.bf16 %v1510_v5  ;;  %v1511_v7 = vunpack.i.l.bf16 %v1510_v5 }
 0x1b9   :  { %v1470_v14 = vpack.c.bf16 %v1517_v12, %v1516_v13 }
 0x1ba   :  { %v1466_v10 = vpack.c.bf16 %v1512_v6, %v1511_v7  ;;  %v861_v15 = vpop.permute.xlu1 %860 }
 0x1bb   :  { %1379 = vmatmul.mubr.msk.f32.vlgmr.msra.gmra.mrb[6].mxu1 %vm379_vm2, %v657_v2  ;;  %v779_v11 = vpop.permute.xlu0 %778  ;;  %v1890_v2 = vshrl.u32 %v552_v63, 7 }
 0x1bc   :  { %1464 = vmatpush3.bf16.xpose.msk.msra.mxu1 %vm1818_vm3, %v1462_v8  ;;  %1392 = vmatprep.mubr.msk.f32.mxu1 %vm1676_vm1, %v1677_v32 }
 0x1bd   :  { %1469 = vmatprep.subr.bf16.mxu1 %v1675_v31  ;;  %v554_v6 = vsub.s32 0, %v1890_v2  ;;  %v758_v12 = vsub.s32 1, %v1890_v2 }
 0x1be   :  { %1386 = vmatmul.mubr.msk.f32.vlgmr.msra.gmra.mrb[6].mxu0 %vm379_vm2, %v779_v11  ;;  %v1065_v17 = vpop.permute.xlu1 %1064 }
 0x1bf   :  { %1468 = vmatpush3.bf16.xpose.msk.msra.mxu0 %vm1818_vm3, %v1466_v10  ;;  %1399 = vmatprep.mubr.msk.f32.mxu0 %vm1676_vm1, %v1677_v32  ;;  %v983_v16 = vpop.permute.xlu0 %982 }
 0x1c2   :  { %v306_v45 = vpop.permute.xlu1 %305 }
 0x1c3   :  { %1393 = vmatmul.mubr.msk.f32.vlgmr.msra.gmra.mrb[8].mxu1 %vm379_vm2, %v861_v15  ;;  %v304_v42 = vpop.permute.xlu0 %303 }
 0x1c4   :  { %1472 = vmatpush3.bf16.xpose.msk.msra.mxu1 %vm1818_vm3, %v1470_v14  ;;  %1406 = vmatprep.mubr.msk.f32.mxu1 %vm1676_vm1, %v1677_v32 }
 0x1c6   :  { %1400 = vmatmul.mubr.msk.f32.vlgmr.msra.gmra.mrb[8].mxu0 %vm379_vm2, %v983_v16  ;;  %v962_v16 = vsub.s32 2, %v1890_v2 }
 0x1c7   :  { %v310_v43 = vpop.permute.xlu0 %309 }
 0x1cb   :  { %1407 = vmatmul.mubr.msk.f32.vlgmr.msra.gmra.mrb[10].mxu1 %vm379_vm2, %v1065_v17  ;;  %v308_v44 = vpop.permute.xlu0 %307 }
 0x213   :  { %v453_v18 = vpop.f32.mrb[2].mxu0 }
 0x214   :  { %v534_v19 = vsel %vm379_vm2, %v453_v18, -inf  ;;  %v1359_v20 = vpop.f32.mrb[3].mxu0 }
 0x215   :  { %535 = vmax.xlane.f32.xlu1 %v534_v19 }
 0x216   :  { %v530_v21 = vpop.f32.mrb[4].mxu1 }
 0x217   :  { %v1366_v22 = vpop.f32.mrb[5].mxu1  ;;  %v537_v23 = vsel %vm379_vm2, %v530_v21, -inf }
 0x218   :  { %538 = vmax.xlane.f32.xlu0 %v537_v23  ;;  %v1166_v22 = vsub.s32 3, %v1890_v2 }
 0x289   :  { %v1869_v24 = vpop.f32.mrb[4].mxu0 }
 0x28a   :  { %v1373_v25 = vpop.f32.mrb[5].mxu0  ;;  %v738_v26 = vsel %vm379_vm2, %v1869_v24, -inf }
 0x28b   :  { %739 = vmax.xlane.f32.xlu0 %v738_v26 }
 0x28e   :  { %v734_v27 = vpop.f32.mrb[6].mxu1 }
 0x28f   :  { %v1380_v28 = vpop.f32.mrb[7].mxu1  ;;  %v741_v29 = vsel %vm379_vm2, %v734_v27, -inf }
 0x290   :  { %742 = vmax.xlane.f32.xlu1 %v741_v29 }
 0x291   :  { %v1874_v30 = vpop.f32.mrb[6].mxu0 }
 0x292   :  { %v1387_v31 = vpop.f32.mrb[7].mxu0  ;;  %v942_v32 = vsel %vm379_vm2, %v1874_v30, -inf }
 0x294   :  { %943 = vmax.xlane.f32.xlu1 %v942_v32 }
 0x296   :  { %v938_v33 = vpop.f32.mrb[8].mxu1 }
 0x297   :  { %v1394_v34 = vpop.f32.mrb[9].mxu1  ;;  %v945_v35 = vsel %vm379_vm2, %v938_v33, -inf }
 0x298   :  { %946 = vmax.xlane.f32.xlu1 %v945_v35 }
 0x299   :  { %v1879_v36 = vpop.f32.mrb[8].mxu0 }
 0x29a   :  { %v1401_v37 = vpop.f32.mrb[9].mxu0  ;;  %v1146_v38 = vsel %vm379_vm2, %v1879_v36, -inf }
 0x29c   :  { %1147 = vmax.xlane.f32.xlu1 %v1146_v38 }
 0x29e   :  { %v1142_v39 = vpop.f32.mrb[10].mxu1 }
 0x29f   :  { %v1408_v40 = vpop.f32.mrb[11].mxu1  ;;  %v1149_v41 = vsel %vm379_vm2, %v1142_v39, -inf }
 0x2a0   :  { %1150 = vmax.xlane.f32.xlu1 %v1149_v41 }
 0x2a2   :  { %v536_v46 = vpop.xlane.xlu1 %535 }
 0x2a3   :  { %v540_v47 = vsub.f32 %v453_v18, %v536_v46 }
 0x2a5   :  { %v542_v48 = vmul.f32 1.442695, %v540_v47  ;;  %v539_v50 = vpop.xlane.xlu0 %538 }
 0x2a6   :  { %v541_v51 = vsub.f32 %v530_v21, %v539_v50 }
 0x2a7   :  { %1519 = vpow2.f32 %v542_v48 }
 0x2a8   :  { %v544_v53 = vmul.f32 1.442695, %v541_v51 }
 0x2aa   :  { %1521 = vpow2.f32 %v544_v53 }
 0x2b1   :  { %v1884_v49 = vpop.eup %1519 }
 0x2b2   :  { %v546_v52 = vsel %vm379_vm2, %v1884_v49, 0.0 }
 0x2b4   :  { %v1522_v55 = vpop.eup %1521 }
 0x2b5   :  { %v549_v56 = vsel %vm379_vm2, %v1522_v55, 0.0 }
 0x2b8   :  { %347 = vxpose.xlu0.b32.start [1/2] (short) (narrow) %v308_v44, 8 }
 0x2bc   :  { %348 = vxpose.xlu0.b32.end [2/2] (short) (narrow) %v310_v43, 8 }
 0x2d3   :  { %315 = vxpose.xlu1.b32.start [1/2] (short) (narrow) %v304_v42, 8 }
 0x2d7   :  { %316 = vxpose.xlu1.b32.end [2/2] (short) (narrow) %v306_v45, 8 }
 0x2e5   :  { %1518 = vset.pattern.permute.xlu0 %v1682_v54 }
 0x2e9   :  { %547 = vadd.xlane.f32.xlu0 %v546_v52 }
 0x2fe   :  { %550 = vadd.xlane.f32.xlu1 %v549_v56 }
 0x318   :  { %v740_v4 = vpop.xlane.xlu0 %739 }
 0x319   :  { %v744_v23 = vsub.f32 %v1869_v24, %v740_v4 }
 0x31b   :  { %v746_v28 = vmul.f32 1.442695, %v744_v23 }
 0x31d   :  { %v743_v57 = vpop.xlane.xlu1 %742 }
 0x31e   :  { %v745_v3 = vsub.f32 %v734_v27, %v743_v57 }
 0x320   :  { %v748_v7 = vmul.f32 1.442695, %v745_v3 }
 0x321   :  { %v944_v58 = vpop.xlane.xlu1 %943 }
 0x325   :  { %v947_v59 = vpop.xlane.xlu1 %946 }
 0x326   :  { %v949_v61 = vsub.f32 %v938_v33, %v947_v59  ;;  %v948_v33 = vsub.f32 %v1874_v30, %v944_v58 }
 0x328   :  { %v952_v0 = vmul.f32 1.442695, %v949_v61  ;;  %v950_v37 = vmul.f32 1.442695, %v948_v33 }
 0x329   :  { %v1148_v60 = vpop.xlane.xlu1 %1147 }
 0x32a   :  { %1523 = vpow2.f32 %v952_v0  ;;  %v1152_v38 = vsub.f32 %v1879_v36, %v1148_v60 }
 0x32c   :  { %v1154_v42 = vmul.f32 1.442695, %v1152_v38 }
 0x32d   :  { %v1151_v62 = vpop.xlane.xlu1 %1150 }
 0x32e   :  { %v1153_v1 = vsub.f32 %v1142_v39, %v1151_v62 }
 0x330   :  { %v1156_v5 = vmul.f32 1.442695, %v1153_v1 }
 0x332   :  { %1525 = vpow2.f32 %v1156_v5 }
 0x333   :  { %1527 = vpow2.f32 %v748_v7 }
 0x334   :  { %v1524_v13 = vpop.eup %1523  ;;  %1529 = vpow2.f32 %v746_v28 }
 0x335   :  { %v957_v14 = vsel %vm379_vm2, %v1524_v13, 0.0  ;;  %1531 = vpow2.f32 %v950_v37 }
 0x336   :  { %1533 = vpow2.f32 %v1154_v42 }
 0x338   :  { %v363_v8 = vpop.trf.xlu0 }
 0x339   :  { %v559_v9 = vrot.slane %v363_v8, %v554_v6  ;;  %v763_v15 = vrot.slane %v363_v8, %v758_v12  ;;  %v967_v21 = vrot.slane %v363_v8, %v962_v16  ;;  %v1171_v27 = vrot.slane %v363_v8, %v1166_v22 }
 0x33b   :  { %v561_v10 = vmul.f32 %v1522_v55, %v559_v9  ;;  %v969_v26 = vmul.f32 %v1524_v13, %v967_v21  ;;  %v1265_v55 = vld [vmem:[#allocation2] ss:$0 sm:$0xff] }
 0x33c   :  { %v1526_v17 = vpop.eup %1525 }
 0x33d   :  { %v565_v11 = vsel %vm379_vm2, %v561_v10, 0.0  ;;  %v1528_v18 = vpop.eup %1527  ;;  %v1161_v19 = vsel %vm379_vm2, %v1526_v17, 0.0  ;;  %v973_v29 = vsel %vm379_vm2, %v969_v26, 0.0  ;;  %v1173_v31 = vmul.f32 %v1526_v17, %v1171_v27 }
 0x33e   :  { %566 = vadd.xlane.f32.xlu1 %v565_v11  ;;  %v765_v20 = vmul.f32 %v1528_v18, %v763_v15  ;;  %v1530_v41 = vpop.eup %1529  ;;  %v753_v45 = vsel %vm379_vm2, %v1528_v18, 0.0  ;;  %v1201_v17 = vand.u32 127, %v552_v63 }
 0x33f   :  { %v1177_v32 = vsel %vm379_vm2, %v1173_v31, 0.0  ;;  %v750_v43 = vsel %vm379_vm2, %v1530_v41, 0.0  ;;  %v1532_v46 = vpop.eup %1531 }
 0x340   :  { %v769_v25 = vsel %vm379_vm2, %v765_v20, 0.0  ;;  %v954_v36 = vsel %vm379_vm2, %v1532_v46, 0.0  ;;  %v1534_v48 = vpop.eup %1533  ;;  %v1206_v28 = vadd.s32 4294967288, %v1201_v17 }
 0x342   :  { %958 = vadd.xlane.f32.xlu1 %v957_v14 }
 0x346   :  { %1162 = vadd.xlane.f32.xlu1 %v1161_v19 }
 0x34a   :  { %770 = vadd.xlane.f32.xlu1 %v769_v25 }
 0x34e   :  { %974 = vadd.xlane.f32.xlu1 %v973_v29 }
 0x352   :  { %1178 = vadd.xlane.f32.xlu1 %v1177_v32 }
 0x353   :  { %v331_v34 = vpop.trf.xlu1 }
 0x354   :  { %v555_v35 = vrot.slane %v331_v34, %v554_v6  ;;  %v759_v40 = vrot.slane %v331_v34, %v758_v12  ;;  %v963_v47 = vrot.slane %v331_v34, %v962_v16  ;;  %v1167_v51 = vrot.slane %v331_v34, %v1166_v22 }
 0x356   :  { %v560_v24 = vmul.f32 %v1884_v49, %v555_v35  ;;  %v764_v44 = vmul.f32 %v1530_v41, %v759_v40  ;;  %v1158_v49 = vsel %vm379_vm2, %v1534_v48, 0.0  ;;  %v968_v50 = vmul.f32 %v1532_v46, %v963_v47 }
 0x357   :  { %v1172_v53 = vmul.f32 %v1534_v48, %v1167_v51  ;;  %v1204_v35 = vsub.s32 %v1201_v17, %v1890_v2 }
 0x358   :  { %v562_v39 = vsel %vm379_vm2, %v560_v24, 0.0  ;;  %v766_v30 = vsel %vm379_vm2, %v764_v44, 0.0  ;;  %v970_v52 = vsel %vm379_vm2, %v968_v50, 0.0  ;;  %v1209_v24 = vsub.s32 %v1206_v28, %v1890_v2 }
 0x359   :  { %563 = vadd.xlane.f32.xlu0 %v562_v39  ;;  %v1174_v54 = vsel %vm379_vm2, %v1172_v53, 0.0 }
 0x35d   :  { %751 = vadd.xlane.f32.xlu0 %v750_v43 }
 0x361   :  { %767 = vadd.xlane.f32.xlu0 %v766_v30 }
 0x365   :  { %754 = vadd.xlane.f32.xlu0 %v753_v45 }
 0x369   :  { %955 = vadd.xlane.f32.xlu0 %v954_v36 }
 0x36d   :  { %1159 = vadd.xlane.f32.xlu0 %v1158_v49 }
 0x371   :  { %971 = vadd.xlane.f32.xlu0 %v970_v52 }
 0x375   :  { %1175 = vadd.xlane.f32.xlu0 %v1174_v54 }
 0x376   :  { %v548_v56 = vpop.xlane.xlu0 %547 }
 0x38b   :  { %1193 = vperm.xlu0 %1518, %v1265_v55   ;;  %v551_v57 = vpop.xlane.xlu1 %550 }
 0x3cb   :  { %v567_v58 = vpop.xlane.xlu1 %566 }
 0x3cf   :  { %v959_v61 = vpop.xlane.xlu1 %958 }
 0x3d3   :  { %v1163_v0 = vpop.xlane.xlu1 %1162 }
 0x3d7   :  { %v771_v4 = vpop.xlane.xlu1 %770 }
 0x3db   :  { %v975_v9 = vpop.xlane.xlu1 %974 }
 0x3df   :  { %v1179_v23 = vpop.xlane.xlu1 %1178 }
 0x3e6   :  { %v564_v59 = vpop.xlane.xlu0 %563 }
 0x3ea   :  { %v752_v60 = vpop.xlane.xlu0 %751 }
 0x3eb   :  { %1535 = vrcp.f32 %v752_v60 }
 0x3ee   :  { %v768_v62 = vpop.xlane.xlu0 %767 }
 0x3f2   :  { %v755_v1 = vpop.xlane.xlu0 %754 }
 0x3f3   :  { %1537 = vrcp.f32 %v755_v1 }
 0x3f4   :  { %1539 = vrcp.f32 %v551_v57 }
 0x3f5   :  { %1541 = vrcp.f32 %v548_v56  ;;  %v1536_v6 = vpop.eup %1535 }
 0x3f6   :  { %1543 = vrcp.f32 %v959_v61  ;;  %v956_v3 = vpop.xlane.xlu0 %955  ;;  %v774_v15 = vmul.f32 %v1536_v6, %v768_v62 }
 0x3f7   :  { %1545 = vrcp.f32 %v956_v3 }
 0x3f8   :  { %1547 = vrcp.f32 %v1163_v0 }
 0x3fa   :  { %v1160_v5 = vpop.xlane.xlu0 %1159 }
 0x3fb   :  { %1549 = vrcp.f32 %v1160_v5 }
 0x3fd   :  { %v1538_v7 = vpop.eup %1537 }
 0x3fe   :  { %v1540_v8 = vpop.eup %1539  ;;  %v775_v10 = vmul.f32 %v1538_v7, %v771_v4  ;;  %v972_v13 = vpop.xlane.xlu0 %971 }
 0x3ff   :  { %v1542_v11 = vpop.eup %1541  ;;  %v571_v12 = vmul.f32 %v1540_v8, %v567_v58 }
 0x400   :  { %v1544_v14 = vpop.eup %1543  ;;  %v570_v19 = vmul.f32 %v1542_v11, %v564_v59 }
 0x401   :  { %v1546_v16 = vpop.eup %1545  ;;  %v777_v18 = vadd.f32 %v775_v10, %v571_v12  ;;  %v979_v21 = vmul.f32 %v1544_v14, %v975_v9 }
 0x402   :  { %v978_v20 = vmul.f32 %v1546_v16, %v972_v13  ;;  %v1548_v22 = vpop.eup %1547  ;;  %v776_v25 = vadd.f32 %v774_v15, %v570_v19  ;;  %v1176_v27 = vpop.xlane.xlu0 %1175 }
 0x403   :  { %v981_v29 = vadd.f32 %v979_v21, %v777_v18  ;;  %v1183_v33 = vmul.f32 %v1548_v22, %v1179_v23 }
 0x404   :  { %v980_v31 = vadd.f32 %v978_v20, %v776_v25 }
 0x405   :  { %v1550_v26 = vpop.eup %1549  ;;  %v1185_v63 = vadd.f32 %v1183_v33, %v981_v29 }
 0x406   :  { %v1182_v32 = vmul.f32 %v1550_v26, %v1176_v27 }
 0x408   :  { %v1184_v34 = vadd.f32 %v1182_v32, %v980_v31 }
 0x40a   :  { %v1194_v37 = vpop.permute.xlu0 %1193 }
 0x40b   :  { %v1196_v38 = vadd.f32 %v1194_v37, %v1184_v34  ;;  %v1197_v39 = vadd.f32 %v1194_v37, %v1185_v63 }
 0x40d   :  { %v1205_v40 = vrot.slane %v1196_v38, %v1204_v35  ;;  %v1210_v41 = vrot.slane %v1197_v39, %v1209_v24 }
 0x40f   :  { %v1212_v42 = vsel %vm1211_vm4, %v1210_v41, %v1205_v40 }
 0x410   :  { %1215 = vst.msk [vmem:[#allocation11] sm:$0x1] %vm1214_vm5, %v1212_v42 }
 0x411   :  { %1650 = shalt.err (!%p1647_p8)
}
 0x412   :  { %s1651_s12 = scalar_lea.hbm %s1936_s7, 16 }
 0x413   :  { %p1652_p9 = scmp.ne.s32.totalorder %s1936_s7, %s1651_s12  ;;  %p1655_p10 = scmp.lt.u32.totalorder %s1651_s12, %s1936_s7 }
 0x415   :  { %p1657_p11 = pnand %p1655_p10, %p1652_p9 }
 0x417   :  { %1660 = shalt.err (!%p1657_p11)
}
 0x418   :  { %1225 = dma.vmem_to_hbm [thread:$0]  %s1223_s8, 16, %s1936_s7, [#allocation5]  }
 0x419   :  { %1667 = dma.done.wait [#allocation5], 16  }
 0x41a   :  { %1668 = vsyncadd [#allocation5], 4294967280 }
 0x41b   :  { %1229 = vsyncpa [#allocation4], 1 }
 0x41c   :  { %1230 = vsyncpa [#allocation7], 1 }
 0x41d   :  { %1231 = vsyncpa [#allocation10], 1 }
 0x41e   :  { %1232 = vsyncpa [#allocation5], 1 }

</bundles_post_ra>
